<compile_context>
chip_gen: v5e
topology: v5e:2x2
jax: 0.10.0
libtpu: 0.0.40
codegen_flags: <defaults>
</compile_context>

<pallas_src>
import math

import jax
import jax.numpy as jnp
from jax.experimental import pallas as pl
from jax.experimental.pallas import tpu as pltpu

_LANES = 128
_XLA_FALLBACK_BYTES = 512 * 1024      # below this, launch overhead dominates
_FLOOR_BLOCK_BYTES = 256 * 1024       # amortize ~0.35 us per-grid-step overhead
_MIN_STEPS = 8                        # pipelining + even-ish split across v7x TCs
_VMEM_LIMIT_BYTES = 40 * 1024 * 1024  # safe on v5e/v6e (128 MiB phys) & v7x (64 MiB)

_block_bytes_cache = None


def _target_block_bytes() -> int:
    """Per-block byte budget: 4 MiB default, 8 MiB on v7x-class chips."""
    global _block_bytes_cache
    if _block_bytes_cache is None:
        bb = 4 * 1024 * 1024
        try:
            info = pltpu.get_tpu_info()
            # v7x-class: ~64 MiB VMEM per TC but 3.2 TB/s HBM -> bigger blocks
            # to keep the per-step overhead tax low.
            if getattr(info, "vmem_capacity_bytes", 128 << 20) <= (96 << 20):
                bb = 8 * 1024 * 1024
        except Exception:
            pass
        _block_bytes_cache = bb
    return _block_bytes_cache


def _round_up(a: int, b: int) -> int:
    return ((a + b - 1) // b) * b


def _add_kernel_factory(scalar: float):
    def kernel(x_ref, o_ref):
        # compile-time constant, added in the input dtype
        o_ref[...] = x_ref[...] + jnp.asarray(scalar, dtype=x_ref.dtype)
    return kernel


# ----------------------------------------------------------------------------
# Fast path: total size is a multiple of 128 -> lane-dense (rows, 128) slab.
# ----------------------------------------------------------------------------
def _add_scalar_lane_dense(x: jax.Array, scalar: float) -> jax.Array:
    shape, dtype = x.shape, x.dtype
    n = x.size
    itemsize = jnp.dtype(dtype).itemsize
    rows = n // _LANES
    x2d = x.reshape(rows, _LANES)

    sub = max(8, 32 // itemsize)                      # packed sublane multiple
    row_bytes = _LANES * itemsize
    block_bytes = _target_block_bytes()
    max_tile_rows = max(sub, (block_bytes // row_bytes) // sub * sub)
    floor_rows = max(sub, min(max_tile_rows,
                              (_FLOOR_BLOCK_BYTES // row_bytes) // sub * sub))

    tile_rows = _round_up(pl.cdiv(rows, _MIN_STEPS), sub)   # ~rows/8 -> pipelining
    tile_rows = max(tile_rows, floor_rows)                  # per-step overhead floor
    tile_rows = min(tile_rows, max_tile_rows)               # VMEM cap
    tile_rows = min(tile_rows, _round_up(rows, sub))        # don't exceed the array

    grid = (pl.cdiv(rows, tile_rows),)

    out2d = pl.pallas_call(
        _add_kernel_factory(scalar),
        out_shape=jax.ShapeDtypeStruct((rows, _LANES), dtype),
        grid=grid,
        in_specs=[pl.BlockSpec((tile_rows, _LANES), lambda i: (i, 0))],
        out_specs=pl.BlockSpec((tile_rows, _LANES), lambda i: (i, 0)),
        compiler_params=pltpu.CompilerParams(
            dimension_semantics=("parallel",),
            vmem_limit_bytes=_VMEM_LIMIT_BYTES,
        ),
        cost_estimate=pl.CostEstimate(
            flops=n, transcendentals=0, bytes_accessed=2 * n * itemsize),
    )(x2d)
    return out2d.reshape(shape)


# ----------------------------------------------------------------------------
# Ragged path: keep the N-D shape, block over the leading dim with full
# trailing dims (no pad pass, no output slice -> one HBM pass each way).
# ----------------------------------------------------------------------------
def _add_scalar_leading_blocked(x: jax.Array, scalar: float) -> jax.Array:
    shape, dtype = x.shape, x.dtype
    n = x.size
    itemsize = jnp.dtype(dtype).itemsize

    if len(shape) < 2:
        # TODO(synk): large 1-D ragged tensors fall back to a fused XLA add;
        # a prefix/tail split would save nothing measurable here.
        return x + jnp.asarray(scalar, dtype=dtype)

    lead, rest = shape[0], shape[1:]
    nrest = len(rest)
    rest_elems = 1
    for d in rest:
        rest_elems *= d
    row_bytes = max(1, rest_elems * itemsize)

    tb = max(1, min(lead, _target_block_bytes() // row_bytes))
    tb = min(tb, max(1, pl.cdiv(lead, _MIN_STEPS)))   # keep several grid steps
    if len(shape) == 2:
        # second-to-last block dim must be a multiple of 8 (or the full dim);
        # an oversized last block is masked by Pallas.
        tb = _round_up(tb, 8)

    grid = (pl.cdiv(lead, tb),)
    block_shape = (tb,) + tuple(rest)

    def index_map(i):
        return (i,) + (0,) * nrest

    return pl.pallas_call(
        _add_kernel_factory(scalar),
        out_shape=jax.ShapeDtypeStruct(shape, dtype),
        grid=grid,
        in_specs=[pl.BlockSpec(block_shape, index_map)],
        out_specs=pl.BlockSpec(block_shape, index_map),
        compiler_params=pltpu.CompilerParams(
            dimension_semantics=("parallel",),
            vmem_limit_bytes=_VMEM_LIMIT_BYTES,
        ),
        cost_estimate=pl.CostEstimate(
            flops=n, transcendentals=0, bytes_accessed=2 * n * itemsize),
    )(x)


# ----------------------------------------------------------------------------
# Dispatcher
# ----------------------------------------------------------------------------
def _add_scalar(x: jax.Array, scalar: float, *, force_pallas: bool = False) -> jax.Array:
    """Elementwise x + scalar, preserving shape and dtype."""
    n = x.size
    if n == 0:
        return x
    itemsize = jnp.dtype(x.dtype).itemsize
    if (not force_pallas) and n * itemsize < _XLA_FALLBACK_BYTES:
        # Custom-call launch + DMA setup would dominate; let XLA fuse the add.
        return x + jnp.asarray(scalar, dtype=x.dtype)
    if n % _LANES == 0:
        return _add_scalar_lane_dense(x, scalar)
    return _add_scalar_leading_blocked(x, scalar)


# ----------------------------------------------------------------------------
# JAX port of _BaseDistribution
# ----------------------------------------------------------------------------
class BaseDistribution:
    """JAX/Pallas port of sampler/_common.py::_BaseDistribution."""

    def __init__(self):
        # TODO(synk): torch device tracking (`.to(device)`) has no JAX analogue.
        self._mul_factor = None

    # --- mul_factor / div_factor properties (semantics mirrored exactly) ----
    @property
    def mul_factor(self):
        return self._mul_factor

    @mul_factor.setter
    def mul_factor(self, value):
        if value is None:
            self._mul_factor = None
        elif (
            isinstance(value, (int, float))
            and value > 0
            and (not math.isnan(value))
            and (not math.isinf(value))
        ):
            self._mul_factor = float(value)
        else:
            raise ValueError(
                f"The mul_factor must be a positive finite scalar, but got {value}."
            )

    @property
    def div_factor(self):
        return 1.0 / self.mul_factor if self.mul_factor is not None else None

    @div_factor.setter
    def div_factor(self, value):
        if value is None:
            self.mul_factor = None
        elif (
            isinstance(value, (int, float))
            and value > 0
            and (not math.isnan(value))
            and (not math.isinf(value))
        ):
            self.mul_factor = 1.0 / float(value)
        else:
            raise ValueError(
                f"The div_factor must be a positive finite scalar, but got {value}."
            )

    # --- abstract pieces -----------------------------------------------------
    def sample(self, *args, **kwargs):
        raise NotImplementedError

    def log_prob(self, *args, **kwargs):
        # Abstract in the reference module; subclasses supply it.
        raise NotImplementedError

    # --- forward -------------------------------------------------------------
    def forward(self, *args, **kwargs) -> jax.Array:
        if self.mul_factor is not None:
            log_mul = math.log(self.mul_factor)
            # Preferred: subclasses whose log_prob is itself a Pallas kernel can
            # expose `log_prob_plus_const(c, ...)` and fold `+ c` into their
            # epilogue store -> the add costs zero extra HBM traffic.
            fused = getattr(self, "log_prob_plus_const", None)
            if callable(fused):
                return fused(log_mul, *args, **kwargs)
            result = self.log_prob(*args, **kwargs)
            return _add_scalar(result, log_mul)
        return self.log_prob(*args, **kwargs)

    __call__ = forward


class _PassThroughDistribution(BaseDistribution):
    """Minimal concrete subclass used only to exercise the base forward():
    log_prob simply returns the pre-computed log-prob tensor it is given."""

    def log_prob(self, logp_values: jax.Array) -> jax.Array:
        return logp_values


# ----------------------------------------------------------------------------
if __name__ == "__main__":
    key = jax.random.PRNGKey(0)
    log25 = math.log(2.5)

    # Pre-computed "log-prob" tensor in PyTorch-style NCHW layout (small).
    x = jax.random.normal(key, (2, 4, 16, 16), dtype=jnp.float32)

    dist = _PassThroughDistribution()
    dist.mul_factor = 2.5  # positive finite scalar -> forward adds log(2.5)

    # 1) forward() on the small tensor (takes the fused-XLA small path).
    out = jax.block_until_ready(dist(x))
    assert out.shape == x.shape and out.dtype == x.dtype
    assert jnp.allclose(out, x + log25, atol=1e-6), "forward mismatch"

    # 2) Force the Pallas lane-dense kernel on the same small tensor.
    out_k = jax.block_until_ready(_add_scalar(x, log25, force_pallas=True))
    assert jnp.allclose(out_k, x + log25, atol=1e-6), "pallas lane-dense mismatch"

    # 3) Medium lane-dense tensor (1 MiB) -> Pallas fast path with a multi-step
    #    pipelined grid (rows=2048, tile=512 -> 4 grid steps).
    xm = jax.random.normal(key, (2, 4, 128, 256), dtype=jnp.float32)
    out_m = jax.block_until_ready(dist(xm))
    assert jnp.allclose(out_m, xm + log25, atol=1e-6), "multi-block mismatch"

    # 4) Ragged (non-multiple-of-128) tensor through the N-D leading-blocked
    #    Pallas path (no pad / no slice).
    z = jax.random.normal(key, (4, 33, 65), dtype=jnp.float32)
    out_z = jax.block_until_ready(_add_scalar(z, log25, force_pallas=True))
    assert jnp.allclose(out_z, z + log25, atol=1e-6), "ragged path mismatch"

    # 5) Ragged small tensor through forward() (fused-XLA small path).
    y = jax.random.normal(key, (3, 5, 7), dtype=jnp.float32)
    out_y = jax.block_until_ready(dist(y))
    assert jnp.allclose(out_y, y + log25, atol=1e-6), "ragged small mismatch"

    # 6) bf16 dtype preserved (forced Pallas path, packed-sublane tile rules).
    xb = jax.random.normal(key, (2, 4, 16, 128), dtype=jnp.bfloat16)
    out_b = jax.block_until_ready(_add_scalar(xb, log25, force_pallas=True))
    assert out_b.dtype == jnp.bfloat16
    assert jnp.allclose(out_b.astype(jnp.float32),
                        (xb + jnp.asarray(log25, jnp.bfloat16)).astype(jnp.float32),
                        atol=2e-2), "bf16 mismatch"

    # 7) div_factor path (mul_factor = 1/4 -> add log(0.25)).
    dist.div_factor = 4.0
    out_div = jax.block_until_ready(dist(xm))
    assert jnp.allclose(out_div, xm + math.log(0.25), atol=1e-6), "div_factor mismatch"

    # 8) mul_factor = None path: forward is identity on log_prob.
    dist.mul_factor = None
    out_none = jax.block_until_ready(dist(x))
    assert jnp.allclose(out_none, x), "mul_factor=None path mismatch"

    print("KERNEL_OK")
</pallas_src>

<mosaic_0001>
module attributes {stable_mosaic.version = 11 : i64} {
  func.func @kernel(%arg0: i32, %arg1: memref<16x128xf32, #tpu.memory_space<vmem>>, %arg2: memref<16x128xf32, #tpu.memory_space<vmem>>) attributes {dimension_semantics = [#tpu.dimension_semantics<parallel>], iteration_bounds = array<i64: 1>, scalar_prefetch = 0 : i64, scratch_operands = 0 : i64, tpu.core_type = #tpu.core_type<tc>, window_params = [{transform_indices = @transform_0, window_bounds = array<i64: 16, 128>}, {transform_indices = @transform_1, window_bounds = array<i64: 16, 128>}]} {
    %c0 = arith.constant 0 : index
    %c0_0 = arith.constant 0 : index
    %0 = vector.load %arg1[%c0, %c0_0] : memref<16x128xf32, #tpu.memory_space<vmem>>, vector<16x128xf32>
    %cst = arith.constant 0.91629076 : f32
    %1 = vector.broadcast %cst : f32 to vector<16x128xf32>
    %2 = arith.addf %0, %1 : vector<16x128xf32>
    %c0_1 = arith.constant 0 : index
    %c0_2 = arith.constant 0 : index
    %3 = vector.load %arg2[%c0_1, %c0_2] : memref<16x128xf32, #tpu.memory_space<vmem>>, vector<16x128xf32>
    tpu.vector_store %arg2[%c0_1, %c0_2], %2 {strides = array<i32>} : memref<16x128xf32, #tpu.memory_space<vmem>>, vector<16x128xf32>,
    return
  }
  func.func @transform_0(%arg0: i32) -> (i32, i32) {
    %c0_i32 = arith.constant 0 : i32
    %c0_i32_0 = arith.constant 0 : i32
    return %arg0, %c0_i32 : i32, i32
  }
  func.func @transform_1(%arg0: i32) -> (i32, i32) {
    %c0_i32 = arith.constant 0 : i32
    %c0_i32_0 = arith.constant 0 : i32
    return %arg0, %c0_i32 : i32, i32
  }
}

</mosaic_0001>

<bundles_post_ra>
// kernel: tpu_custom_call.1
= control target key start
LH: loop header
LB: loop body
LE: loop exit
PB: predicated region body
PF: predicated region fallthrough
CT: control target
= control target key end

     0   :  { %6 = vsyncpa [#allocation3], 0  ;;  %s126_s0 = inlined_call_operand.hbm [shape: f32[16,128], index: 0, kind: input, shape index: {}]   ;;  %s127_s1 = inlined_call_operand.hbm [shape: f32[16,128], index: 1, kind: output, shape index: {}]  }
   0x1   :  { %7 = vsyncpa [#allocation4], 0  ;;  %s12_s8 = sshll.u32 %s126_s0, 4  ;;  %s106_s9 = smov [#allocation2]   ;;  %s13_s8 = int_to_ptr.hbm [resolvable:$true] %s12_s8 }
   0x2   :  { %s14_s10 = sshll.u32 %s106_s9, 4  ;;  %s107_s11 = smov 128   ;;  %s15_s10 = int_to_ptr.vmem [resolvable:$true] %s14_s10 }
   0x3   :  { %s108_s12 = smov 8  }
   0x4   :  { %20 = dma.hbm_to_vmem [thread:$0]  %s13_s8, 256, %s15_s10, [#allocation3], %s107_s11, %s107_s11, %s108_s12  }
   0x5   :  { %102 = dma.done.wait [#allocation3], 256  }
   0x6   :  { %103 = vsyncadd [#allocation3], 4294967040  ;;  %s109_s13 = smov [#allocation5]   ;;  %s37_s17 = sshll.u32 %s127_s1, 4  ;;  %v25_v0 = vld [vmem:[#allocation2] sm:$0xff]  ;;  %v26_v1 = vld [vmem:[#allocation2 + $0x8] sm:$0xff]  ;;  %s38_s17 = int_to_ptr.hbm [resolvable:$true] %s37_s17 }
   0x7   :  { %s35_s14 = sshll.u32 %s109_s13, 4  ;;  %v27_v2 = vadd.f32 0.91629076, %v25_v0  ;;  %v28_v3 = vadd.f32 0.91629076, %v26_v1  ;;  %s36_s14 = int_to_ptr.vmem [resolvable:$true] %s35_s14 }
   0x9   :  { %29 = vst [vmem:[#allocation5] sm:$0xff] %v27_v2 }
   0xa   :  { %30 = vst [vmem:[#allocation5 + $0x8] sm:$0xff] %v28_v3 }
   0xb   :  { %43 = dma.vmem_to_hbm [thread:$0]  %s36_s14, 256, %s38_s17, [#allocation4], %s107_s11, %s107_s11, %s108_s12  }
   0xc   :  { %104 = dma.done.wait [#allocation4], 256  }
   0xd   :  { %105 = vsyncadd [#allocation4], 4294967040 }
   0xe   :  { %48 = vsyncpa [#allocation3], 1 }
   0xf   :  { %49 = vsyncpa [#allocation4], 1 }

</bundles_post_ra>
